<compile_context>
chip_gen: v7x
topology: tpu7x:2x2x1
jax: 0.10.0
libtpu: 0.0.40
codegen_flags: <defaults>
</compile_context>

<pallas_src>
import functools
import math

import jax
import jax.numpy as jnp
from jax import lax
from jax.experimental import pallas as pl
from jax.experimental.pallas import tpu as pltpu


@functools.lru_cache(maxsize=1)
def _vmem_limit_bytes():
    """Generation-aware scoped-VMEM limit (~75% of physical capacity)."""
    cap = 64 * 1024 * 1024  # conservative fallback (v7x physical size)
    try:
        info = pltpu.get_tpu_info()
        cap = int(getattr(info, "vmem_capacity_bytes", cap))
    except Exception:
        pass
    return max(32 * 1024 * 1024, min((cap * 3) // 4, 100 * 1024 * 1024))


def _pick_tile(n, max_tile, align):
    """Largest multiple of `align` that is <= max_tile and divides n; else full extent."""
    t = (min(n, max_tile) // align) * align
    while t >= align:
        if n % t == 0:
            return t
        t -= align
    return n


def _largest_divisor_leq(n, cap):
    for c in range(min(n, max(cap, 1)), 0, -1):
        if n % c == 0:
            return c
    return 1


# --------------------------------------------------------------------------- #
# Linear kernel: y = (x @ W + b) * scale   (scale folds 1/sqrt(d_k) into Q)
# --------------------------------------------------------------------------- #
def _linear_kernel(x_ref, w_ref, b_ref, o_ref, *, scale, compute_dtype):
    x = x_ref[...].astype(compute_dtype)
    w = w_ref[...]                                   # pre-cast once in the wrapper
    acc = jnp.dot(x, w, preferred_element_type=jnp.float32)   # MXU, f32 accumulate
    acc = acc + b_ref[...].astype(jnp.float32)
    if scale != 1.0:
        acc = acc * jnp.float32(scale)
    o_ref[...] = acc.astype(o_ref.dtype)


def _linear(x, w, b, *, scale=1.0, compute_dtype=None, out_dtype=None):
    rows, din = x.shape
    dout = w.shape[1]
    compute_dtype = x.dtype if compute_dtype is None else compute_dtype
    out_dtype = x.dtype if out_dtype is None else out_dtype
    if w.dtype != compute_dtype:
        w = w.astype(compute_dtype)                  # one-time cast; block stays resident
    tr = _pick_tile(rows, 512, 8)

    kernel = functools.partial(_linear_kernel, scale=float(scale),
                               compute_dtype=compute_dtype)
    return pl.pallas_call(
        kernel,
        out_shape=jax.ShapeDtypeStruct((rows, dout), out_dtype),
        grid_spec=pltpu.PrefetchScalarGridSpec(
            num_scalar_prefetch=0,
            grid=(rows // tr,),
            in_specs=[
                pl.BlockSpec((tr, din), lambda i: (i, 0)),
                # Weights / bias: constant index map -> block stays resident.
                pl.BlockSpec((din, dout), lambda i: (0, 0)),
                pl.BlockSpec((1, dout), lambda i: (0, 0)),
            ],
            out_specs=pl.BlockSpec((tr, dout), lambda i: (i, 0)),
        ),
        compiler_params=pltpu.CompilerParams(
            dimension_semantics=("parallel",),
            vmem_limit_bytes=_vmem_limit_bytes()),
    )(x, w, b)


# --------------------------------------------------------------------------- #
# Flash-style attention core with additive relative bias (online softmax)
# Grid: (batch, head_blocks, q_tiles, kv_tiles); inputs are head-major.
# --------------------------------------------------------------------------- #
def _flash_attn_kernel(q_ref, k_ref, v_ref, rel_ref, o_ref,
                       m_sc, l_sc, acc_sc, *, compute_dtype):
    kv_i = pl.program_id(3)

    @pl.when(kv_i == 0)
    def _init():
        m_sc[...] = jnp.full(m_sc.shape, -jnp.inf, dtype=m_sc.dtype)
        l_sc[...] = jnp.zeros(l_sc.shape, dtype=l_sc.dtype)
        acc_sc[...] = jnp.zeros(acc_sc.shape, dtype=acc_sc.dtype)

    # Head-major blocks straight from the DMA: no in-kernel reshape/transpose,
    # no per-step cast (operands already in compute_dtype).
    q = q_ref[0]                                     # (hb, tq, d_k), carries 1/sqrt(d_k)
    k = k_ref[0]                                     # (hb, tk, d_k)
    v = v_ref[0]                                     # (hb, tk, d_v)

    # QK^T with heads batched; contract the last dims (no explicit k.T).
    s = lax.dot_general(q, k, (((2,), (2,)), ((0,), (0,))),
                        preferred_element_type=jnp.float32)        # (hb, tq, tk) f32
    s = s + rel_ref[0].astype(jnp.float32)                          # additive bias tile

    # Running stats kept lane-replicated (hb, tq, 128) -> unmasked stores.
    m_prev = m_sc[...]
    m_new = jnp.maximum(m_prev, jnp.max(s, axis=-1, keepdims=True))  # (hb, tq, 128)
    alpha = jnp.exp(m_prev - m_new)                                   # (hb, tq, 128)
    p = jnp.exp(s - m_new[:, :, :1])                                  # (hb, tq, tk) f32

    l_sc[...] = alpha * l_sc[...] + jnp.sum(p, axis=-1, keepdims=True)
    pv = lax.dot_general(p.astype(compute_dtype), v,
                         (((2,), (1,)), ((0,), (0,))),
                         preferred_element_type=jnp.float32)          # (hb, tq, d_v)
    acc_sc[...] = alpha[:, :, :1] * acc_sc[...] + pv
    m_sc[...] = m_new

    @pl.when(kv_i == pl.num_programs(3) - 1)
    def _finalize():
        # TODO(synk): nn.Dropout on attention probabilities omitted (eval-mode identity).
        l_cur = l_sc[...]
        inv_l = pl.reciprocal(l_cur[:, :, :1], approx=True)           # EUP slot
        o_ref[0] = (acc_sc[...] * inv_l).astype(o_ref.dtype)


def _flash_attention(q, k, v, relative, *, h, d_k, d_v, compute_dtype):
    """q: (b, h, nq, d_k) pre-scaled; k: (b, h, nk, d_k); v: (b, h, nk, d_v);
    relative: (b or 1, h, nq, nk).  Returns (b, h, nq, d_v) in compute_dtype."""
    b_s, _, nq, _ = q.shape
    nk = k.shape[2]

    tq = _pick_tile(nq, 128, 8)        # q tile (sublane-aligned or full extent)
    tk = _pick_tile(nk, 256, 128)      # kv tile (lane-aligned or full extent)

    # Bound the live f32 score/prob tile to ~128 KiB (vreg budget / spill control).
    max_hb = max(1, (128 * 1024) // max(1, tq * tk * 4))
    hb = _largest_divisor_leq(h, max_hb)
    # Keep the parallel grid extent >= 2 so both v7x TensorCores get work.
    if b_s * (h // hb) * (nq // tq) < 2 and hb > 1:
        hb = _largest_divisor_leq(h, hb // 2)

    # Stream the bias in compute_dtype (bf16 path halves the dominant HBM stream).
    if relative.dtype != compute_dtype:
        relative = relative.astype(compute_dtype)

    # Support a broadcastable (1, h, nq, nk) bias as the PyTorch module does.
    if relative.shape[0] == 1:
        rel_map = lambda b, hi, qi, ki: (0, hi, qi, ki)
    else:
        rel_map = lambda b, hi, qi, ki: (b, hi, qi, ki)

    kernel = functools.partial(_flash_attn_kernel, compute_dtype=compute_dtype)
    return pl.pallas_call(
        kernel,
        out_shape=jax.ShapeDtypeStruct((b_s, h, nq, d_v), compute_dtype),
        grid_spec=pltpu.PrefetchScalarGridSpec(
            num_scalar_prefetch=0,
            grid=(b_s, h // hb, nq // tq, nk // tk),
            in_specs=[
                pl.BlockSpec((1, hb, tq, d_k), lambda b, hi, qi, ki: (b, hi, qi, 0)),  # q (resident over ki)
                pl.BlockSpec((1, hb, tk, d_k), lambda b, hi, qi, ki: (b, hi, ki, 0)),  # k
                pl.BlockSpec((1, hb, tk, d_v), lambda b, hi, qi, ki: (b, hi, ki, 0)),  # v
                pl.BlockSpec((1, hb, tq, tk), rel_map),                                # rel bias tile
            ],
            out_specs=pl.BlockSpec((1, hb, tq, d_v), lambda b, hi, qi, ki: (b, hi, qi, 0)),
            scratch_shapes=[
                pltpu.VMEM((hb, tq, 128), jnp.float32),   # running max (lane-replicated)
                pltpu.VMEM((hb, tq, 128), jnp.float32),   # running denom (lane-replicated)
                pltpu.VMEM((hb, tq, d_v), jnp.float32),   # running numerator
            ],
        ),
        compiler_params=pltpu.CompilerParams(
            dimension_semantics=("parallel", "parallel", "parallel", "arbitrary"),
            vmem_limit_bytes=_vmem_limit_bytes()),
    )(q, k, v, relative)


# --------------------------------------------------------------------------- #
# Full module forward
# --------------------------------------------------------------------------- #
def scaled_dot_product_attention_rela(queries, keys, values, relative, params,
                                      *, h, d_k, d_v, compute_dtype=None):
    """Forward pass of ScaledDotProductAttentionRela (eval mode, mask=None,
    attention_weights=None)."""
    b_s, nq, d_model = queries.shape
    nk = keys.shape[1]
    wq, bq, wk, bk, wv, bv, wo, bo = params
    cd = queries.dtype if compute_dtype is None else compute_dtype

    # Projections over flattened rows -> real MXU M dimension; 1/sqrt(d_k)
    # folded into q.  Outputs are emitted directly in compute_dtype.
    q = _linear(queries.reshape(b_s * nq, d_model), wq, bq,
                scale=1.0 / math.sqrt(d_k), compute_dtype=cd, out_dtype=cd)
    k = _linear(keys.reshape(b_s * nk, d_model), wk, bk, compute_dtype=cd, out_dtype=cd)
    v = _linear(values.reshape(b_s * nk, d_model), wv, bv, compute_dtype=cd, out_dtype=cd)

    # One-time head-major relayout (single XLA HBM pass) so the attention kernel
    # never pays per-kv-step reshape/transpose/cast of Q/K/V.
    q = q.reshape(b_s, nq, h, d_k).transpose(0, 2, 1, 3)
    k = k.reshape(b_s, nk, h, d_k).transpose(0, 2, 1, 3)
    v = v.reshape(b_s, nk, h, d_v).transpose(0, 2, 1, 3)

    attn = _flash_attention(q, k, v, relative, h=h, d_k=d_k, d_v=d_v, compute_dtype=cd)

    attn = attn.transpose(0, 2, 1, 3).reshape(b_s * nq, h * d_v)
    out = _linear(attn, wo, bo, compute_dtype=cd, out_dtype=queries.dtype)
    return out.reshape(b_s, nq, d_model)


# --------------------------------------------------------------------------- #
# Reference + self-check
# --------------------------------------------------------------------------- #
def _xavier_uniform(key, fan_in, fan_out):
    limit = math.sqrt(6.0 / (fan_in + fan_out))
    return jax.random.uniform(key, (fan_in, fan_out), dtype=jnp.float32,
                              minval=-limit, maxval=limit)


def _reference(queries, keys, values, relative, params, *, h, d_k, d_v):
    """Plain-JAX replica of the PyTorch forward (eval mode) for validation."""
    wq, bq, wk, bk, wv, bv, wo, bo = params
    b_s, nq, _ = queries.shape
    nk = keys.shape[1]
    q = (queries @ wq + bq).reshape(b_s, nq, h, d_k).transpose(0, 2, 1, 3)
    k = (keys @ wk + bk).reshape(b_s, nk, h, d_k).transpose(0, 2, 3, 1)
    v = (values @ wv + bv).reshape(b_s, nk, h, d_v).transpose(0, 2, 1, 3)
    att = (q @ k) / math.sqrt(d_k) + relative
    att = jax.nn.softmax(att, axis=-1)
    out = (att @ v).transpose(0, 2, 1, 3).reshape(b_s, nq, h * d_v)
    return out @ wo + bo


if __name__ == "__main__":
    # Small, module-consistent shapes.
    b_s, nq, nk = 2, 8, 8
    d_model, d_k, d_v, h = 32, 16, 16, 4

    root = jax.random.PRNGKey(0)
    ks = jax.random.split(root, 8)

    # Deterministic parameter init (matches the module's init scheme:
    # xavier_uniform weights, zero biases), stored as (in, out).
    wq = _xavier_uniform(ks[0], d_model, h * d_k)
    wk = _xavier_uniform(ks[1], d_model, h * d_k)
    wv = _xavier_uniform(ks[2], d_model, h * d_v)
    wo = _xavier_uniform(ks[3], h * d_v, d_model)
    bq = jnp.zeros((1, h * d_k), jnp.float32)
    bk = jnp.zeros((1, h * d_k), jnp.float32)
    bv = jnp.zeros((1, h * d_v), jnp.float32)
    bo = jnp.zeros((1, d_model), jnp.float32)
    params = (wq, bq, wk, bk, wv, bv, wo, bo)

    queries = jax.random.normal(ks[4], (b_s, nq, d_model), jnp.float32)
    keys = jax.random.normal(ks[5], (b_s, nk, d_model), jnp.float32)
    values = jax.random.normal(ks[6], (b_s, nk, d_model), jnp.float32)
    relative = 0.1 * jax.random.normal(ks[7], (b_s, h, nq, nk), jnp.float32)

    ref = _reference(queries, keys, values, relative, params, h=h, d_k=d_k, d_v=d_v)

    # f32 path.
    out = scaled_dot_product_attention_rela(
        queries, keys, values, relative, params, h=h, d_k=d_k, d_v=d_v)
    out = jax.block_until_ready(out)
    assert out.shape == (b_s, nq, d_model)
    assert jnp.allclose(out, ref, atol=5e-3, rtol=5e-3), "f32 kernel mismatch vs reference"

    # bf16 MXU-operand fast path (v6e/v7x): softmax math stays f32.
    out_bf16 = scaled_dot_product_attention_rela(
        queries, keys, values, relative, params, h=h, d_k=d_k, d_v=d_v,
        compute_dtype=jnp.bfloat16)
    out_bf16 = jax.block_until_ready(out_bf16)
    assert jnp.allclose(out_bf16, ref, atol=5e-2, rtol=5e-2), "bf16 kernel mismatch vs reference"

    print("KERNEL_OK")
</pallas_src>

<mosaic_0001>
module attributes {stable_mosaic.version = 11 : i64} {
  func.func @_linear_kernel(%arg0: i32, %arg1: memref<16x32xf32, #tpu.memory_space<vmem>>, %arg2: memref<32x64xf32, #tpu.memory_space<vmem>>, %arg3: memref<1x64xf32, #tpu.memory_space<vmem>>, %arg4: memref<16x64xf32, #tpu.memory_space<vmem>>) attributes {dimension_semantics = [#tpu.dimension_semantics<parallel>], iteration_bounds = array<i64: 1>, scalar_prefetch = 0 : i64, scratch_operands = 0 : i64, tpu.core_type = #tpu.core_type<tc>, window_params = [{transform_indices = @transform_0, window_bounds = array<i64: 16, 32>}, {pipeline_mode = #tpu.pipeline_mode<synchronous>, transform_indices = @transform_1, window_bounds = array<i64: 32, 64>}, {pipeline_mode = #tpu.pipeline_mode<synchronous>, transform_indices = @transform_2, window_bounds = array<i64: 1, 64>}, {transform_indices = @transform_3, window_bounds = array<i64: 16, 64>}]} {
    %c0 = arith.constant 0 : index
    %c0_0 = arith.constant 0 : index
    %0 = vector.load %arg1[%c0, %c0_0] : memref<16x32xf32, #tpu.memory_space<vmem>>, vector<16x32xf32>
    %c0_1 = arith.constant 0 : index
    %c0_2 = arith.constant 0 : index
    %1 = vector.load %arg2[%c0_1, %c0_2] : memref<32x64xf32, #tpu.memory_space<vmem>>, vector<32x64xf32>
    %cst = arith.constant dense<0.000000e+00> : vector<16x64xf32>
    %2 = tpu.matmul %0, %1, %cst {dimension_numbers = #tpu.dot_dimension_numbers<[1], [0], [0], [1], [0, 0, 1, 1], [], []>} : vector<16x32xf32>, vector<32x64xf32>, vector<16x64xf32> -> vector<16x64xf32>
    %c0_3 = arith.constant 0 : index
    %c0_4 = arith.constant 0 : index
    %3 = vector.load %arg3[%c0_3, %c0_4] : memref<1x64xf32, #tpu.memory_space<vmem>>, vector<1x64xf32>
    %4 = vector.broadcast %3 : vector<1x64xf32> to vector<16x64xf32>
    %5 = arith.addf %2, %4 : vector<16x64xf32>
    %cst_5 = arith.constant 2.500000e-01 : f32
    %6 = vector.broadcast %cst_5 : f32 to vector<16x64xf32>
    %7 = arith.mulf %5, %6 : vector<16x64xf32>
    %c0_6 = arith.constant 0 : index
    %c0_7 = arith.constant 0 : index
    %8 = vector.load %arg4[%c0_6, %c0_7] : memref<16x64xf32, #tpu.memory_space<vmem>>, vector<16x64xf32>
    tpu.vector_store %arg4[%c0_6, %c0_7], %7 {strides = array<i32>} : memref<16x64xf32, #tpu.memory_space<vmem>>, vector<16x64xf32>,
    return
  }
  func.func @transform_0(%arg0: i32) -> (i32, i32) {
    %c0_i32 = arith.constant 0 : i32
    %c0_i32_0 = arith.constant 0 : i32
    return %arg0, %c0_i32 : i32, i32
  }
  func.func @transform_1(%arg0: i32) -> (i32, i32) {
    %c0_i32 = arith.constant 0 : i32
    %c0_i32_0 = arith.constant 0 : i32
    %c0_i32_1 = arith.constant 0 : i32
    return %c0_i32, %c0_i32_0 : i32, i32
  }
  func.func @transform_2(%arg0: i32) -> (i32, i32) {
    %c0_i32 = arith.constant 0 : i32
    %c0_i32_0 = arith.constant 0 : i32
    %c0_i32_1 = arith.constant 0 : i32
    return %c0_i32, %c0_i32_0 : i32, i32
  }
  func.func @transform_3(%arg0: i32) -> (i32, i32) {
    %c0_i32 = arith.constant 0 : i32
    %c0_i32_0 = arith.constant 0 : i32
    return %arg0, %c0_i32 : i32, i32
  }
}

</mosaic_0001>

<bundles_post_ra>
// kernel: tpu_custom_call.1
= control target key start
LH: loop header
LB: loop body
LE: loop exit
PB: predicated region body
PF: predicated region fallthrough
CT: control target
= control target key end

     0   :  { %8 = vsyncpa [#allocation3], 0  ;;  %s339_s0 = inlined_call_operand.hbm [shape: f32[16,32], index: 0, kind: input, shape index: {}]   ;;  %s340_s1 = inlined_call_operand.hbm [shape: f32[32,64], index: 1, kind: input, shape index: {}]   ;;  %s341_s2 = inlined_call_operand.vmem [shape: f32[1,64], index: 2, kind: input, shape index: {}]   ;;  %s342_s3 = inlined_call_operand.hbm [shape: f32[16,64], index: 3, kind: output, shape index: {}]  }
   0x1   :  { %9 = vsyncpa [#allocation6], 0 }
   0x2   :  { %10 = vsyncpa [#allocation4], 0  ;;  %s266_s12 = smov [#allocation2]   ;;  %s194_s16 = scalar_lea.hbm %s339_s0, 256 }
   0x3   :  { %s16_s13 = sshll.u32 %s266_s12, 4  ;;  %p195_p0 = scmp.ne.s32.totalorder %s339_s0, %s194_s16  ;;  %s17_s13 = int_to_ptr.vmem [resolvable:$true] %s16_s13 }
   0x4   :  { %p198_p1 = scmp.lt.u32.totalorder %s194_s16, %s339_s0 }
   0x6   :  { %p200_p2 = pnand %p198_p1, %p195_p0 }
   0x8   :  { %203 = shalt.err (!%p200_p2)
}
   0x9   :  { %s204_s21 = scalar_lea.vmem %s17_s13, 256  ;;  %p209_p4 = scmp.lt.s32.totalorder %s17_s13, %s17_s13 }
   0xa   :  { %p205_p3 = scmp.ne.s32.totalorder %s17_s13, %s204_s21  ;;  %p210_p5 = scmp.lt.s32.totalorder %s204_s21, %s204_s21 }
   0xc   :  { %p211_p6 = por %p210_p5, %p209_p4 }
   0xe   :  { %p212_p7 = pnand %p211_p6, %p205_p3 }
  0x10   :  { %215 = shalt.err (!%p212_p7)
}
  0x11   :  { %s267_s22 = smov 128   ;;  %s268_s23 = smov 8  }
  0x12   :  { %22 = dma.hbm_to_vmem [thread:$0]  %s339_s0, 256, %s17_s13, [#allocation3], %s267_s22, %s267_s22, %s268_s23  }
  0x13   :  { %s269_s26 = smov [#allocation5]   ;;  %s216_s30 = scalar_lea.hbm %s340_s1, 512 }
  0x14   :  { %s28_s27 = sshll.u32 %s269_s26, 4  ;;  %p217_p8 = scmp.ne.s32.totalorder %s340_s1, %s216_s30  ;;  %s29_s27 = int_to_ptr.vmem [resolvable:$true] %s28_s27 }
  0x15   :  { %p220_p9 = scmp.lt.u32.totalorder %s216_s30, %s340_s1 }
  0x17   :  { %p222_p10 = pnand %p220_p9, %p217_p8 }
  0x19   :  { %225 = shalt.err (!%p222_p10)
}
  0x1a   :  { %s226_s8 = scalar_lea.vmem %s29_s27, 512  ;;  %p231_p12 = scmp.lt.s32.totalorder %s29_s27, %s29_s27 }
  0x1b   :  { %p227_p11 = scmp.ne.s32.totalorder %s29_s27, %s226_s8  ;;  %p232_p13 = scmp.lt.s32.totalorder %s226_s8, %s226_s8 }
  0x1d   :  { %p233_p0 = por %p232_p13, %p231_p12 }
  0x1f   :  { %p234_p1 = pnand %p233_p0, %p227_p11 }
  0x21   :  { %237 = shalt.err (!%p234_p1)
}
  0x22   :  { %34 = dma.hbm_to_vmem [thread:$0]  %s340_s1, 512, %s29_s27, [#allocation6], %s267_s22, %s267_s22, %s268_s23  }
  0x23   :  { %260 = dma.done.wait [#allocation3], 256  }
  0x24   :  { %261 = vsyncadd [#allocation3], 4294967040 }
  0x25   :  { %262 = dma.done.wait [#allocation6], 512  }
  0x26   :  { %263 = vsyncadd [#allocation6], 4294966784  ;;  %vm56_vm0 = vcmask 261120   ;;  %v45_v0 = vld [vmem:[#allocation5] sm:$0xff]  ;;  %v46_v1 = vld [vmem:[#allocation5 + $0x8] sm:$0xff]  ;;  %s270_s11 = smov [#allocation7]  }
  0x27   :  { %v47_v2 = vld [vmem:[#allocation5 + $0x10] sm:$0xff]  ;;  %v181_v3 = vpack.c.bf16 %v46_v1, %v45_v0  ;;  %v48_v4 = vld [vmem:[#allocation5 + $0x18] sm:$0xff]  ;;  %s148_s12 = sshll.u32 %s270_s11, 4  ;;  %vm140_vm1 = vcmask 523264   ;;  %s149_s12 = int_to_ptr.vmem [resolvable:$true] %s148_s12 }
  0x28   :  { %v43_v5 = vld [vmem:[#allocation2] sm:$0xff]  ;;  %v185_v6 = vpack.c.bf16 %v48_v4, %v47_v2  ;;  %v44_v7 = vld [vmem:[#allocation2 + $0x8] sm:$0xff]  ;;  %s238_s13 = scalar_lea.vmem %s149_s12, 256  ;;  %p243_p3 = scmp.lt.s32.totalorder %s149_s12, %s149_s12 }
  0x29   :  { %178 = vmatprep.mubr.msk.f32.mxu0 %vm56_vm0, %v43_v5  ;;  %182 = vmatprep.subr.bf16.mxu0 %v181_v3  ;;  %v161_v8 = vld [vmem:[%s341_s2] ss:$0 sm:$0xff]  ;;  %p239_p2 = scmp.ne.s32.totalorder %s149_s12, %s238_s13  ;;  %p244_p4 = scmp.lt.s32.totalorder %s238_s13, %s238_s13 }
  0x2a   :  { %184 = vmatpush3.bf16.msra.mxu0 %v181_v3 }
  0x2b   :  { %186 = vmatprep.subr.bf16.mxu0 %v185_v6  ;;  %p245_p5 = por %p244_p4, %p243_p3 }
  0x2d   :  { %p246_p6 = pnand %p245_p5, %p239_p2 }
  0x2e   :  { %188 = vmatpush3.bf16.msra.mxu0 %v185_v6 }
  0x31   :  { %179 = vmatmul.mubr.msk.f32.vlgmr.msra.gmra.mrb[0].mxu0 %vm56_vm0, %v44_v7 }
 0x104   :  { %v180_v9 = vpop.f32.mrb[0].mxu0 }
 0x105   :  { %v135_v10 = vadd.f32 %v180_v9, %v161_v8  ;;  %v129_v11 = vpop.f32.mrb[1].mxu0 }
 0x106   :  { %v130_v12 = vadd.f32 %v161_v8, %v129_v11 }
 0x107   :  { %v139_v13 = vmul.f32 0.25, %v135_v10 }
 0x108   :  { %v138_v14 = vmul.f32 0.25, %v130_v12 }
 0x109   :  { %142 = vst.msk [vmem:[#allocation7 + $0x8] sm:$0xff] %vm140_vm1, %v139_v13 }
 0x10a   :  { %141 = vst.msk [vmem:[#allocation7] sm:$0xff] %vm140_vm1, %v138_v14 }
 0x10b   :  { %249 = shalt.err (!%p246_p6)
}
 0x10c   :  { %s250_s15 = scalar_lea.hbm %s342_s3, 256 }
 0x10d   :  { %p251_p7 = scmp.ne.s32.totalorder %s342_s3, %s250_s15  ;;  %p254_p8 = scmp.lt.u32.totalorder %s250_s15, %s342_s3 }
 0x10f   :  { %p256_p9 = pnand %p254_p8, %p251_p7 }
 0x111   :  { %259 = shalt.err (!%p256_p9)
}
 0x112   :  { %154 = dma.vmem_to_hbm [thread:$0]  %s149_s12, 256, %s342_s3, [#allocation4], %s267_s22, %s267_s22, %s268_s23  }
 0x113   :  { %264 = dma.done.wait [#allocation4], 256  }
 0x114   :  { %265 = vsyncadd [#allocation4], 4294967040 }
 0x115   :  { %158 = vsyncpa [#allocation3], 1 }
 0x116   :  { %159 = vsyncpa [#allocation6], 1 }
 0x117   :  { %160 = vsyncpa [#allocation4], 1 }

</bundles_post_ra>
